<compile_context>
chip_gen: v7x
topology: tpu7x:2x2x1
jax: 0.10.0
libtpu: 0.0.40
codegen_flags: <defaults>
</compile_context>

<pallas_src>
import jax
import jax.numpy as jnp
from jax.experimental import pallas as pl
from jax.experimental.pallas import tpu as pltpu


def _make_fma_reduce_kernel(n_taps):
    acc_dtype = jnp.float32

    def kernel(idx_ref, unf_ref, k_ref, o_ref):
        # idx_ref: (1,) int32 in SMEM (scalar prefetch; consumed by index_maps only)
        # unf_ref: (n_taps, B*C, HW)  pre-unfolded image taps (sublane-packed)
        # k_ref:   (1, n_taps, HW)    per-pixel kernel taps for patch `idx`
        # o_ref:   (B*C, HW)
        del idx_ref
        unf = unf_ref[...]          # (n_taps, BC, HW)
        k = k_ref[0]                # (n_taps, HW)
        # Trace-time guarded casts (no-op for f32 inputs).  On v6e/v7x bf16
        # inputs could stay bf16 on the VPU; kept f32 here so the same code is
        # correct/fast on v5e (no bf16 VPU).
        if unf.dtype != acc_dtype:
            unf = unf.astype(acc_dtype)
        if k.dtype != acc_dtype:
            k = k.astype(acc_dtype)

        # Unrolled lane-dense FMA reduce over the ks^2 taps; accumulator is
        # initialized from tap 0 (saves the zero materialization + one vadd).
        # The per-tap sublane broadcast of k[t] rides the otherwise-idle XLU slot.
        acc = unf[0] * k[0][None, :]
        for t in range(1, n_taps):
            acc = acc + unf[t] * k[t][None, :]
        o_ref[...] = acc.astype(o_ref.dtype)

    return kernel


def pointwise_conv_blur(img, kernels, idx, ks):
    """Pallas equivalent of PointwiseConvBlurModel.forward(img, idx).

    img:     (B, C, H_full, W_full)
    kernels: (num_patches, 1, ks*ks, Hp*Wp)   (the nn.Parameter from weights_init)
    idx:     patch index (python int or scalar array; runtime value, no retrace)
    ks:      (static) odd kernel size
    """
    if ks % 2 != 1:
        raise ValueError("PointwiseConvBlurModel semantics require odd ks "
                         "(Hp = Hf - 2*(ks//2) == Hf - (ks-1)).")
    B, C, Hf, Wf = img.shape
    Hp = Hf - (ks - 1)
    Wp = Wf - (ks - 1)
    HW = Hp * Wp
    n_taps = ks * ks
    num_patches = kernels.shape[0]
    BC = B * C

    if isinstance(idx, int) and not (0 <= idx < num_patches):
        raise ValueError(f"idx={idx} out of range for {num_patches} patches")

    # Lane-dense kernel layout: (num_patches, ks*ks, Hp*Wp).
    kern = kernels.reshape(num_patches, n_taps, HW)

    # Pre-unfold image taps (nn.Unfold ordering: kh slow, kw fast), B and C
    # flattened onto the sublane axis, spatial flattened onto lanes:
    # (n_taps, B*C, HW).
    taps = [
        img[:, :, di:di + Hp, dj:dj + Wp].reshape(BC, HW)
        for di in range(ks)
        for dj in range(ks)
    ]
    unf = jnp.stack(taps, axis=0)

    idx_arr = jnp.asarray(idx, dtype=jnp.int32).reshape((1,))

    # PyTorch promotion semantics for kernels * unfolded_img.
    out_dtype = jnp.promote_types(img.dtype, kernels.dtype)

    out_flat = pl.pallas_call(
        _make_fma_reduce_kernel(n_taps),
        out_shape=jax.ShapeDtypeStruct((BC, HW), out_dtype),
        grid_spec=pltpu.PrefetchScalarGridSpec(
            num_scalar_prefetch=1,
            # Single grid step: whole problem (~90 KiB) in one block — no
            # per-step pipeline overhead on single-TC v5e/v6e.
            grid=(1,),
            in_specs=[
                # all taps / all (B*C) rows in one block
                pl.BlockSpec((n_taps, BC, HW), lambda s, idx_ref: (0, 0, 0)),
                # the selected patch's kernel taps, chosen via scalar prefetch
                pl.BlockSpec((1, n_taps, HW),
                             lambda s, idx_ref: (idx_ref[0], 0, 0)),
            ],
            out_specs=pl.BlockSpec((BC, HW), lambda s, idx_ref: (0, 0)),
        ),
        compiler_params=pltpu.CompilerParams(
            dimension_semantics=("arbitrary",)),
    )(idx_arr, unf, kern)

    return out_flat.reshape(B, C, Hp, Wp)


def ref_forward(img, kernels, idx, ks):
    """Pure-JAX reference mirroring the PyTorch forward exactly (odd ks)."""
    B, C, Hf, Wf = img.shape
    Hp = Hf - 2 * (ks // 2)
    Wp = Wf - 2 * (ks // 2)
    # nn.Unfold: output dim ordered as (c slow, kh, kw fast), spatial L = Hp*Wp
    cols = []
    for di in range(ks):
        for dj in range(ks):
            cols.append(img[:, :, di:di + Hp, dj:dj + Wp].reshape(B, C, 1, Hp * Wp))
    unf = jnp.concatenate(cols, axis=2)                       # (B, C, ks^2, Hp*Wp)
    blurry = (kernels[idx] * unf).sum(axis=2, keepdims=True)  # (B, C, 1, Hp*Wp)
    return blurry.reshape(B, C, Hp, Wp)


if __name__ == "__main__":
    # Small, deterministic synthetic setup consistent with the module:
    #   ks = 3 (odd kernel size), patch_size = (16, 16) => Hp = Wp = 16,
    #   input image patch has (ks - 1) = 2 extra rows/cols: 18 x 18,
    #   num_patches = 4 patch kernels, pick idx = 1.
    ks = 3
    Hp, Wp = 16, 16
    B, C = 2, 4
    num_patches = 4
    Hf, Wf = Hp + (ks - 1), Wp + (ks - 1)

    key = jax.random.PRNGKey(0)
    k_img, k_kern = jax.random.split(key)

    img = jax.random.normal(k_img, (B, C, Hf, Wf), dtype=jnp.float32)

    # Deterministic synthetic "blur" kernels: positive, normalized over taps,
    # shaped like the nn.Parameter after weights_init: (num_patches, 1, ks^2, Hp*Wp).
    raw = jax.random.uniform(k_kern, (num_patches, 1, ks * ks, Hp * Wp),
                             dtype=jnp.float32, minval=0.1, maxval=1.0)
    kernels = raw / raw.sum(axis=2, keepdims=True)

    idx = 1
    blur = jax.jit(pointwise_conv_blur, static_argnames=("ks",))
    out = blur(img, kernels, idx, ks)
    out = jax.block_until_ready(out)

    expected = ref_forward(img, kernels, idx, ks)
    assert out.shape == (B, C, Hp, Wp)
    assert jnp.allclose(out, expected, atol=1e-5, rtol=1e-5), "mismatch vs reference"

    print("KERNEL_OK")
</pallas_src>

<mosaic_0001>
module attributes {stable_mosaic.version = 11 : i64} {
  func.func @kernel(%arg0: i32, %arg1: memref<1xi32, #tpu.memory_space<smem>>, %arg2: memref<9x8x256xf32, #tpu.memory_space<vmem>>, %arg3: memref<1x9x256xf32, #tpu.memory_space<vmem>>, %arg4: memref<8x256xf32, #tpu.memory_space<vmem>>) attributes {dimension_semantics = [#tpu.dimension_semantics<arbitrary>], iteration_bounds = array<i64: 1>, scalar_prefetch = 1 : i64, scratch_operands = 0 : i64, tpu.core_type = #tpu.core_type<tc>, window_params = [{pipeline_mode = #tpu.pipeline_mode<synchronous>, transform_indices = @transform_0, window_bounds = array<i64: 9, 8, 256>}, {transform_indices = @transform_1, window_bounds = array<i64: 1, 9, 256>}, {pipeline_mode = #tpu.pipeline_mode<synchronous>, transform_indices = @transform_2, window_bounds = array<i64: 8, 256>}]} {
    %c0 = arith.constant 0 : index
    %c0_0 = arith.constant 0 : index
    %c0_1 = arith.constant 0 : index
    %0 = vector.load %arg2[%c0, %c0_0, %c0_1] : memref<9x8x256xf32, #tpu.memory_space<vmem>>, vector<9x8x256xf32>
    %c0_2 = arith.constant 0 : index
    %c0_3 = arith.constant 0 : index
    %c0_4 = arith.constant 0 : index
    %1 = vector.load %arg3[%c0_2, %c0_3, %c0_4] : memref<1x9x256xf32, #tpu.memory_space<vmem>>, vector<1x9x256xf32>
    %2 = vector.shape_cast %1 : vector<1x9x256xf32> to vector<9x256xf32>
    %3 = vector.extract_strided_slice %0 {offsets = [0, 0, 0], sizes = [1, 8, 256], strides = [1, 1, 1]} : vector<9x8x256xf32> to vector<1x8x256xf32>
    %4 = vector.shape_cast %3 : vector<1x8x256xf32> to vector<8x256xf32>
    %5 = vector.extract_strided_slice %2 {offsets = [0, 0], sizes = [1, 256], strides = [1, 1]} : vector<9x256xf32> to vector<1x256xf32>
    %6 = vector.shape_cast %5 : vector<1x256xf32> to vector<256xf32>
    %7 = vector.shape_cast %6 : vector<256xf32> to vector<1x256xf32>
    %8 = vector.broadcast %7 : vector<1x256xf32> to vector<8x256xf32>
    %9 = arith.mulf %4, %8 : vector<8x256xf32>
    %10 = vector.extract_strided_slice %0 {offsets = [1, 0, 0], sizes = [1, 8, 256], strides = [1, 1, 1]} : vector<9x8x256xf32> to vector<1x8x256xf32>
    %11 = vector.shape_cast %10 : vector<1x8x256xf32> to vector<8x256xf32>
    %12 = vector.extract_strided_slice %2 {offsets = [1, 0], sizes = [1, 256], strides = [1, 1]} : vector<9x256xf32> to vector<1x256xf32>
    %13 = vector.shape_cast %12 : vector<1x256xf32> to vector<256xf32>
    %14 = vector.shape_cast %13 : vector<256xf32> to vector<1x256xf32>
    %15 = vector.broadcast %14 : vector<1x256xf32> to vector<8x256xf32>
    %16 = arith.mulf %11, %15 : vector<8x256xf32>
    %17 = arith.addf %9, %16 : vector<8x256xf32>
    %18 = vector.extract_strided_slice %0 {offsets = [2, 0, 0], sizes = [1, 8, 256], strides = [1, 1, 1]} : vector<9x8x256xf32> to vector<1x8x256xf32>
    %19 = vector.shape_cast %18 : vector<1x8x256xf32> to vector<8x256xf32>
    %20 = vector.extract_strided_slice %2 {offsets = [2, 0], sizes = [1, 256], strides = [1, 1]} : vector<9x256xf32> to vector<1x256xf32>
    %21 = vector.shape_cast %20 : vector<1x256xf32> to vector<256xf32>
    %22 = vector.shape_cast %21 : vector<256xf32> to vector<1x256xf32>
    %23 = vector.broadcast %22 : vector<1x256xf32> to vector<8x256xf32>
    %24 = arith.mulf %19, %23 : vector<8x256xf32>
    %25 = arith.addf %17, %24 : vector<8x256xf32>
    %26 = vector.extract_strided_slice %0 {offsets = [3, 0, 0], sizes = [1, 8, 256], strides = [1, 1, 1]} : vector<9x8x256xf32> to vector<1x8x256xf32>
    %27 = vector.shape_cast %26 : vector<1x8x256xf32> to vector<8x256xf32>
    %28 = vector.extract_strided_slice %2 {offsets = [3, 0], sizes = [1, 256], strides = [1, 1]} : vector<9x256xf32> to vector<1x256xf32>
    %29 = vector.shape_cast %28 : vector<1x256xf32> to vector<256xf32>
    %30 = vector.shape_cast %29 : vector<256xf32> to vector<1x256xf32>
    %31 = vector.broadcast %30 : vector<1x256xf32> to vector<8x256xf32>
    %32 = arith.mulf %27, %31 : vector<8x256xf32>
    %33 = arith.addf %25, %32 : vector<8x256xf32>
    %34 = vector.extract_strided_slice %0 {offsets = [4, 0, 0], sizes = [1, 8, 256], strides = [1, 1, 1]} : vector<9x8x256xf32> to vector<1x8x256xf32>
    %35 = vector.shape_cast %34 : vector<1x8x256xf32> to vector<8x256xf32>
    %36 = vector.extract_strided_slice %2 {offsets = [4, 0], sizes = [1, 256], strides = [1, 1]} : vector<9x256xf32> to vector<1x256xf32>
    %37 = vector.shape_cast %36 : vector<1x256xf32> to vector<256xf32>
    %38 = vector.shape_cast %37 : vector<256xf32> to vector<1x256xf32>
    %39 = vector.broadcast %38 : vector<1x256xf32> to vector<8x256xf32>
    %40 = arith.mulf %35, %39 : vector<8x256xf32>
    %41 = arith.addf %33, %40 : vector<8x256xf32>
    %42 = vector.extract_strided_slice %0 {offsets = [5, 0, 0], sizes = [1, 8, 256], strides = [1, 1, 1]} : vector<9x8x256xf32> to vector<1x8x256xf32>
    %43 = vector.shape_cast %42 : vector<1x8x256xf32> to vector<8x256xf32>
    %44 = vector.extract_strided_slice %2 {offsets = [5, 0], sizes = [1, 256], strides = [1, 1]} : vector<9x256xf32> to vector<1x256xf32>
    %45 = vector.shape_cast %44 : vector<1x256xf32> to vector<256xf32>
    %46 = vector.shape_cast %45 : vector<256xf32> to vector<1x256xf32>
    %47 = vector.broadcast %46 : vector<1x256xf32> to vector<8x256xf32>
    %48 = arith.mulf %43, %47 : vector<8x256xf32>
    %49 = arith.addf %41, %48 : vector<8x256xf32>
    %50 = vector.extract_strided_slice %0 {offsets = [6, 0, 0], sizes = [1, 8, 256], strides = [1, 1, 1]} : vector<9x8x256xf32> to vector<1x8x256xf32>
    %51 = vector.shape_cast %50 : vector<1x8x256xf32> to vector<8x256xf32>
    %52 = vector.extract_strided_slice %2 {offsets = [6, 0], sizes = [1, 256], strides = [1, 1]} : vector<9x256xf32> to vector<1x256xf32>
    %53 = vector.shape_cast %52 : vector<1x256xf32> to vector<256xf32>
    %54 = vector.shape_cast %53 : vector<256xf32> to vector<1x256xf32>
    %55 = vector.broadcast %54 : vector<1x256xf32> to vector<8x256xf32>
    %56 = arith.mulf %51, %55 : vector<8x256xf32>
    %57 = arith.addf %49, %56 : vector<8x256xf32>
    %58 = vector.extract_strided_slice %0 {offsets = [7, 0, 0], sizes = [1, 8, 256], strides = [1, 1, 1]} : vector<9x8x256xf32> to vector<1x8x256xf32>
    %59 = vector.shape_cast %58 : vector<1x8x256xf32> to vector<8x256xf32>
    %60 = vector.extract_strided_slice %2 {offsets = [7, 0], sizes = [1, 256], strides = [1, 1]} : vector<9x256xf32> to vector<1x256xf32>
    %61 = vector.shape_cast %60 : vector<1x256xf32> to vector<256xf32>
    %62 = vector.shape_cast %61 : vector<256xf32> to vector<1x256xf32>
    %63 = vector.broadcast %62 : vector<1x256xf32> to vector<8x256xf32>
    %64 = arith.mulf %59, %63 : vector<8x256xf32>
    %65 = arith.addf %57, %64 : vector<8x256xf32>
    %66 = vector.extract_strided_slice %0 {offsets = [8, 0, 0], sizes = [1, 8, 256], strides = [1, 1, 1]} : vector<9x8x256xf32> to vector<1x8x256xf32>
    %67 = vector.shape_cast %66 : vector<1x8x256xf32> to vector<8x256xf32>
    %68 = vector.extract_strided_slice %2 {offsets = [8, 0], sizes = [1, 256], strides = [1, 1]} : vector<9x256xf32> to vector<1x256xf32>
    %69 = vector.shape_cast %68 : vector<1x256xf32> to vector<256xf32>
    %70 = vector.shape_cast %69 : vector<256xf32> to vector<1x256xf32>
    %71 = vector.broadcast %70 : vector<1x256xf32> to vector<8x256xf32>
    %72 = arith.mulf %67, %71 : vector<8x256xf32>
    %73 = arith.addf %65, %72 : vector<8x256xf32>
    %c0_5 = arith.constant 0 : index
    %c0_6 = arith.constant 0 : index
    %74 = vector.load %arg4[%c0_5, %c0_6] : memref<8x256xf32, #tpu.memory_space<vmem>>, vector<8x256xf32>
    tpu.vector_store %arg4[%c0_5, %c0_6], %73 {strides = array<i32>} : memref<8x256xf32, #tpu.memory_space<vmem>>, vector<8x256xf32>,
    return
  }
  func.func @transform_0(%arg0: i32, %arg1: memref<1xi32, #tpu.memory_space<smem>>) -> (i32, i32, i32) {
    %c0_i32 = arith.constant 0 : i32
    %c0_i32_0 = arith.constant 0 : i32
    %c0_i32_1 = arith.constant 0 : i32
    %c0_i32_2 = arith.constant 0 : i32
    return %c0_i32, %c0_i32_0, %c0_i32_1 : i32, i32, i32
  }
  func.func @transform_1(%arg0: i32, %arg1: memref<1xi32, #tpu.memory_space<smem>>) -> (i32, i32, i32) {
    %c0 = arith.constant 0 : index
    %0 = memref.load %arg1[%c0] : memref<1xi32, #tpu.memory_space<smem>>
    %c0_i32 = arith.constant 0 : i32
    %c0_i32_0 = arith.constant 0 : i32
    %c0_i32_1 = arith.constant 0 : i32
    return %0, %c0_i32, %c0_i32_0 : i32, i32, i32
  }
  func.func @transform_2(%arg0: i32, %arg1: memref<1xi32, #tpu.memory_space<smem>>) -> (i32, i32) {
    %c0_i32 = arith.constant 0 : i32
    %c0_i32_0 = arith.constant 0 : i32
    %c0_i32_1 = arith.constant 0 : i32
    return %c0_i32, %c0_i32_0 : i32, i32
  }
}

</mosaic_0001>

<bundles_post_ra>
// kernel: pointwise_conv_blur.1
= control target key start
LH: loop header
LB: loop body
LE: loop exit
PB: predicated region body
PF: predicated region fallthrough
CT: control target
= control target key end

     0   :  { %v55_v0 = vlaneseq  ;;  %s283_s0 = inlined_call_operand.<no memory space> [shape: s32[1], index: 0, kind: input, shape index: {}]   ;;  %s284_s1 = inlined_call_operand.vmem [shape: f32[9,8,256], index: 1, kind: input, shape index: {}]   ;;  %s285_s2 = inlined_call_operand.vmem [shape: f32[4,9,256], index: 2, kind: input, shape index: {}]   ;;  %s286_s3 = inlined_call_operand.vmem [shape: f32[8,256], index: 3, kind: output, shape index: {}]  }
   0x1   :  { %p27_p0 = scmp.lt.s32.totalorder %s283_s0, 3  ;;  %v33_v7 = vld [vmem:[%s284_s1] sm:$0xff]  ;;  %v35_v8 = vld [vmem:[%s284_s1 + $0x10] sm:$0xff]  ;;  %v34_v26 = vld [vmem:[%s284_s1 + $0x8] sm:$0xff] }
   0x2   :  { %v201_v1 = vshrl.u32 %v55_v0, 7  ;;  %v37_v9 = vld [vmem:[%s284_s1 + $0x20] sm:$0xff]  ;;  %v39_v16 = vld [vmem:[%s284_s1 + $0x30] sm:$0xff]  ;;  %v36_v27 = vld [vmem:[%s284_s1 + $0x18] sm:$0xff] }
   0x3   :  { %s288_s0 = smov (!%p27_p0, %s283_s0), 3  ;;  %v41_v20 = vld [vmem:[%s284_s1 + $0x40] sm:$0xff]  ;;  %v43_v28 = vld [vmem:[%s284_s1 + $0x50] sm:$0xff]  ;;  %v38_v31 = vld [vmem:[%s284_s1 + $0x28] sm:$0xff] }
   0x4   :  { %v57_v2 = vsub.s32 0, %v201_v1  ;;  %v67_v3 = vsub.s32 1, %v201_v1  ;;  %v79_v4 = vsub.s32 2, %v201_v1  ;;  %v91_v5 = vsub.s32 3, %v201_v1  ;;  %s177_s16 = sshll.u32 %s288_s0, 5  ;;  %v40_v36 = vld [vmem:[%s284_s1 + $0x38] sm:$0xff] }
   0x5   :  { %v103_v6 = vsub.s32 4, %v201_v1  ;;  %s214_s19 = scalar_lea.vmem %s285_s2, %s177_s16  ;;  %v115_v11 = vsub.s32 5, %v201_v1  ;;  %v127_v19 = vsub.s32 6, %v201_v1  ;;  %v139_v25 = vsub.s32 7, %v201_v1  ;;  %v45_v39 = vld [vmem:[%s284_s1 + $0x60] sm:$0xff]  ;;  %v42_v46 = vld [vmem:[%s284_s1 + $0x48] sm:$0xff] }
   0x6   :  { %v51_v10 = vld [vmem:[%s214_s19] sm:$0xff]  ;;  %v52_v17 = vld [vmem:[%s214_s19 + $0x8] sm:$0xff]  ;;  %v47_v48 = vld [vmem:[%s284_s1 + $0x70] sm:$0xff] }
   0x7   :  { %v58_v12 = vrot.slane %v51_v10, %v57_v2  ;;  %v68_v13 = vrot.slane %v51_v10, %v67_v3  ;;  %v80_v14 = vrot.slane %v51_v10, %v79_v4  ;;  %v92_v15 = vrot.slane %v51_v10, %v91_v5  ;;  %v44_v54 = vld [vmem:[%s284_s1 + $0x58] sm:$0xff]  ;;  %v49_v59 = vld [vmem:[%s284_s1 + $0x80] sm:$0xff]  ;;  %v175_v60 = vld [vmem:[%s214_s19 + $0x10] ss:$0 sm:$0xff] }
   0x8   :  { %v104_v18 = vrot.slane %v51_v10, %v103_v6  ;;  %v116_v24 = vrot.slane %v51_v10, %v115_v11  ;;  %v62_v32 = vrot.slane %v52_v17, %v57_v2  ;;  %v72_v33 = vrot.slane %v52_v17, %v67_v3  ;;  %v46_v62 = vld [vmem:[%s284_s1 + $0x68] sm:$0xff]  ;;  %v48_v3 = vld [vmem:[%s284_s1 + $0x78] sm:$0xff] }
   0x9   :  { %v63_v21 = vmul.f32 %v58_v12, %v33_v7  ;;  %v73_v22 = vmul.f32 %v68_v13, %v35_v8  ;;  %v85_v23 = vmul.f32 %v80_v14, %v37_v9  ;;  %v97_v30 = vmul.f32 %v92_v15, %v39_v16  ;;  %v50_v8 = vld [vmem:[%s284_s1 + $0x88] sm:$0xff]  ;;  %v176_v9 = vld [vmem:[%s214_s19 + $0x18] ss:$0 sm:$0xff] }
   0xa   :  { %v109_v34 = vmul.f32 %v104_v18, %v41_v20  ;;  %v128_v35 = vrot.slane %v51_v10, %v127_v19  ;;  %v84_v37 = vrot.slane %v52_v17, %v79_v4  ;;  %v96_v38 = vrot.slane %v52_v17, %v91_v5 }
   0xb   :  { %v75_v29 = vadd.f32 %v73_v22, %v63_v21  ;;  %v64_v41 = vmul.f32 %v62_v32, %v34_v26  ;;  %v74_v42 = vmul.f32 %v72_v33, %v36_v27  ;;  %v108_v43 = vrot.slane %v52_v17, %v103_v6 }
   0xc   :  { %v121_v44 = vmul.f32 %v116_v24, %v43_v28  ;;  %v140_v45 = vrot.slane %v51_v10, %v139_v25  ;;  %v86_v47 = vmul.f32 %v84_v37, %v38_v31  ;;  %v98_v51 = vmul.f32 %v96_v38, %v40_v36 }
   0xd   :  { %v87_v40 = vadd.f32 %v85_v23, %v75_v29  ;;  %v76_v50 = vadd.f32 %v74_v42, %v64_v41  ;;  %v120_v52 = vrot.slane %v52_v17, %v115_v11  ;;  %v133_v53 = vmul.f32 %v128_v35, %v45_v39 }
   0xe   :  { %v110_v57 = vmul.f32 %v108_v43, %v42_v46  ;;  %v132_v58 = vrot.slane %v52_v17, %v127_v19  ;;  %v145_v61 = vmul.f32 %v140_v45, %v47_v48  ;;  %v144_v2 = vrot.slane %v52_v17, %v139_v25 }
   0xf   :  { %v99_v49 = vadd.f32 %v97_v30, %v87_v40  ;;  %v88_v56 = vadd.f32 %v86_v47, %v76_v50  ;;  %v122_v1 = vmul.f32 %v120_v52, %v44_v54  ;;  %v157_v5 = vmul.f32 %v175_v60, %v49_v59 }
  0x10   :  { %v134_v7 = vmul.f32 %v132_v58, %v46_v62  ;;  %v146_v12 = vmul.f32 %v144_v2, %v48_v3  ;;  %v158_v15 = vmul.f32 %v176_v9, %v50_v8 }
  0x11   :  { %v111_v55 = vadd.f32 %v109_v34, %v99_v49  ;;  %v100_v0 = vadd.f32 %v98_v51, %v88_v56 }
  0x13   :  { %v123_v63 = vadd.f32 %v121_v44, %v111_v55  ;;  %v112_v6 = vadd.f32 %v110_v57, %v100_v0 }
  0x15   :  { %v135_v4 = vadd.f32 %v133_v53, %v123_v63  ;;  %v124_v11 = vadd.f32 %v122_v1, %v112_v6 }
  0x17   :  { %v147_v10 = vadd.f32 %v145_v61, %v135_v4  ;;  %v136_v14 = vadd.f32 %v134_v7, %v124_v11 }
  0x19   :  { %v159_v13 = vadd.f32 %v157_v5, %v147_v10  ;;  %v148_v16 = vadd.f32 %v146_v12, %v136_v14 }
  0x1b   :  { %161 = vst [vmem:[%s286_s3] sm:$0xff] %v159_v13  ;;  %v160_v17 = vadd.f32 %v158_v15, %v148_v16 }
  0x1d   :  { %162 = vst [vmem:[%s286_s3 + $0x8] sm:$0xff] %v160_v17 }

</bundles_post_ra>
